<compile_context>
chip_gen: v7x
topology: tpu7x:2x2x1
jax: 0.10.0
libtpu: 0.0.40
codegen_flags: <defaults>
</compile_context>

<pallas_src>
import functools

import jax
import jax.numpy as jnp
import numpy as np
from jax.experimental import pallas as pl
from jax.experimental.pallas import tpu as pltpu

# Lane-tile padded channel widths (multiples of 128 => lane-dense layouts).
CIN1_PAD = 32    # conv1 input channels padded so the s2d contraction is 4*32 = 128
C1_PAD = 128     # conv1 output channels
C2_PAD = 128     # conv2 output channels (== pooled-feature width)
H_PAD = 128      # fc output width


def _round_up(x, m):
    return (x + m - 1) // m * m


# ---------------------------------------------------------------------------
# Kernels
# ---------------------------------------------------------------------------
def _conv2x2_relu_kernel(x_ref, w_ref, b_ref, o_ref, *, ws, l_rows):
    """One image: stride-1 2x2 conv over a flattened space-to-depth input.

    x_ref: (Npix_pad, Cs)   bf16, rows are s2d pixels in row-major (Hs, Ws) order
    w_ref: (4, Cs, Co)      bf16, offset-major (i0*2 + j0) 2x2 kernel
    b_ref: (1, Co)          f32
    o_ref: (l_rows, Co)     bf16; row i*ws + j is output pixel (i, j) for j < ws-1
    """
    acc = jnp.dot(x_ref[0:l_rows, :], w_ref[0],
                  preferred_element_type=jnp.float32)
    for t, (i0, j0) in enumerate(((0, 1), (1, 0), (1, 1)), start=1):
        start = i0 * ws + j0                         # static -> contiguous row slice
        acc = acc + jnp.dot(x_ref[start:start + l_rows, :], w_ref[t],
                            preferred_element_type=jnp.float32)
    o_ref[...] = jnp.maximum(acc + b_ref[...], 0.0).astype(o_ref.dtype)


def _conv2x2_relu_pool_kernel(x_ref, w_ref, b_ref, m_ref, o_ref, *, ws, l_rows):
    """Same conv, fused with the masked spatial mean-pool (feature map never
    leaves VMEM). m_ref holds 1/(Ho*Wo) at valid rows and 0 at the Ws-wrap /
    alignment-padding garbage rows."""
    acc = jnp.dot(x_ref[0:l_rows, :], w_ref[0],
                  preferred_element_type=jnp.float32)
    for t, (i0, j0) in enumerate(((0, 1), (1, 0), (1, 1)), start=1):
        start = i0 * ws + j0
        acc = acc + jnp.dot(x_ref[start:start + l_rows, :], w_ref[t],
                            preferred_element_type=jnp.float32)
    y = jnp.maximum(acc + b_ref[...], 0.0)
    o_ref[...] = jnp.sum(y * m_ref[...], axis=0, keepdims=True).astype(o_ref.dtype)


def _fc_tanh_kernel(p_ref, w_ref, b_ref, o_ref):
    # Tiny head: kept f32 for final-output precision (negligible cost).
    logits = jnp.dot(p_ref[...], w_ref[...],
                     preferred_element_type=jnp.float32) + b_ref[...]
    o_ref[...] = jnp.tanh(logits)


# ---------------------------------------------------------------------------
# Layout glue (single cheap pass per layer; no 9x im2col replication)
# ---------------------------------------------------------------------------
def _space_to_depth2(x):
    """(B, H, W, C) with even H, W -> (B, H/2, W/2, 4C). Channel blocks are the
    four (row%2, col%2) phases in order (0,0),(0,1),(1,0),(1,1)."""
    B, H, W, C = x.shape
    x = x.reshape(B, H // 2, 2, W // 2, 2, C)
    x = jnp.transpose(x, (0, 1, 3, 2, 4, 5))
    return x.reshape(B, H // 2, W // 2, 4 * C)


def _prep_conv_input(x_nhwc, cin_pad):
    """NHWC activation -> (B, Npix_pad, 4*cin_pad) bf16 flattened s2d input
    for a 3x3 / stride-2 / pad-1 conv."""
    B, H, W, C = x_nhwc.shape
    x = jnp.pad(x_nhwc, ((0, 0), (0, 0), (0, 0), (0, cin_pad - C)))
    x = jnp.pad(x, ((0, 0), (1, 1), (1, 1), (0, 0)))       # conv padding = 1
    x = _space_to_depth2(x)                                 # (B, Hs, Ws, 4*cin_pad)
    _, hs, ws, cs = x.shape
    ho = hs - 1
    l_rows = _round_up(ho * ws, 8)                          # sublane-aligned row count
    npix_pad = _round_up(l_rows + ws + 1, 8)                # covers the (1,1) window too
    x = x.reshape(B, hs * ws, cs)
    x = jnp.pad(x, ((0, 0), (0, npix_pad - hs * ws), (0, 0)))
    return x.astype(jnp.bfloat16), hs, ws


def _prep_conv_weight(w_oikk, b, cin_pad, cout_pad):
    """(Cout, Cin, 3, 3) torch conv weight -> (4, 4*cin_pad, cout_pad) bf16
    space-to-depth 2x2 kernel, plus (1, cout_pad) f32 bias."""
    cout, cin, _, _ = w_oikk.shape
    w = jnp.pad(w_oikk.astype(jnp.float32), ((0, 0), (0, 0), (0, 1), (0, 1)))
    w = w.reshape(cout, cin, 2, 2, 2, 2)                    # (o, c, i0, pr, j0, pc)
    w = jnp.transpose(w, (2, 4, 3, 5, 1, 0))                # (i0, j0, pr, pc, c, o)
    w = jnp.pad(w, ((0, 0), (0, 0), (0, 0), (0, 0),
                    (0, cin_pad - cin), (0, cout_pad - cout)))
    w = w.reshape(4, 4 * cin_pad, cout_pad).astype(jnp.bfloat16)
    b_pad = jnp.zeros((1, cout_pad), jnp.float32).at[0, :cout].set(
        b.astype(jnp.float32))
    return w, b_pad


# ---------------------------------------------------------------------------
# pallas_call wrappers
# ---------------------------------------------------------------------------
def _conv_pallas(x_flat, w_s2d, b_pad, *, ws, ho, wo, pool):
    B, npix, cs = x_flat.shape
    co = w_s2d.shape[-1]
    l_rows = _round_up(ho * ws, 8)
    flops = 2 * B * 4 * l_rows * cs * co

    in_specs = [
        pl.BlockSpec((None, npix, cs), lambda b: (b, 0, 0)),   # one image / grid step
        pl.BlockSpec((4, cs, co), lambda b: (0, 0, 0)),        # weights stay resident
        pl.BlockSpec((1, co), lambda b: (0, 0)),               # bias stays resident
    ]
    args = [x_flat, w_s2d, b_pad]

    if pool:
        r = np.arange(l_rows)
        valid = (r < ho * ws) & (r % ws < wo)
        mask = valid.astype(np.float32) / float(ho * wo)
        args.append(jnp.asarray(mask.reshape(l_rows, 1)))
        in_specs.append(pl.BlockSpec((l_rows, 1), lambda b: (0, 0)))
        kernel = functools.partial(_conv2x2_relu_pool_kernel, ws=ws, l_rows=l_rows)
        out_shape = jax.ShapeDtypeStruct((B, 1, co), jnp.float32)
        out_spec = pl.BlockSpec((None, 1, co), lambda b: (b, 0, 0))
        out_bytes = B * co * 4
    else:
        kernel = functools.partial(_conv2x2_relu_kernel, ws=ws, l_rows=l_rows)
        out_shape = jax.ShapeDtypeStruct((B, l_rows, co), jnp.bfloat16)
        out_spec = pl.BlockSpec((None, l_rows, co), lambda b: (b, 0, 0))
        out_bytes = B * l_rows * co * 2

    cost = pl.CostEstimate(
        flops=flops, transcendentals=0,
        bytes_accessed=x_flat.size * 2 + w_s2d.size * 2 + b_pad.size * 4 + out_bytes)

    return pl.pallas_call(
        kernel,
        out_shape=out_shape,
        grid=(B,),
        in_specs=in_specs,
        out_specs=out_spec,
        compiler_params=pltpu.CompilerParams(
            dimension_semantics=("parallel",)),
        cost_estimate=cost,
    )(*args)


def _head_pallas(pooled, w_fc_pad, b_fc_pad):
    B, cpad = pooled.shape
    hpad = w_fc_pad.shape[-1]
    cost = pl.CostEstimate(
        flops=2 * B * cpad * hpad, transcendentals=B * hpad,
        bytes_accessed=4 * (pooled.size + w_fc_pad.size + b_fc_pad.size + B * hpad))
    return pl.pallas_call(
        _fc_tanh_kernel,
        out_shape=jax.ShapeDtypeStruct((B, hpad), jnp.float32),
        grid=(1,),
        in_specs=[pl.BlockSpec((B, cpad), lambda i: (0, 0)),
                  pl.BlockSpec((cpad, hpad), lambda i: (0, 0)),
                  pl.BlockSpec((1, hpad), lambda i: (0, 0))],
        out_specs=pl.BlockSpec((B, hpad), lambda i: (0, 0)),
        compiler_params=pltpu.CompilerParams(
            dimension_semantics=("arbitrary",)),
        cost_estimate=cost,
    )(pooled, w_fc_pad, b_fc_pad)


# ---------------------------------------------------------------------------
# Module equivalent
# ---------------------------------------------------------------------------
def init_params(key, in_ch=4, hidden_size=32):
    """Deterministic synthetic backbone + head parameters (He-style scaling)."""
    k1, k2, k3, k4, k5, k6 = jax.random.split(key, 6)
    c1, c2 = 8, 16   # backbone channels; c2 == backbone.fc.in_features analogue
    return {
        "conv1_w": jax.random.normal(k1, (c1, in_ch, 3, 3), jnp.float32)
                   * (2.0 / (in_ch * 9)) ** 0.5,
        "conv1_b": jax.random.normal(k2, (c1,), jnp.float32) * 0.01,
        "conv2_w": jax.random.normal(k3, (c2, c1, 3, 3), jnp.float32)
                   * (2.0 / (c1 * 9)) ** 0.5,
        "conv2_b": jax.random.normal(k4, (c2,), jnp.float32) * 0.01,
        "fc_w":    jax.random.normal(k5, (hidden_size, c2), jnp.float32)
                   * (1.0 / c2) ** 0.5,
        "fc_b":    jax.random.normal(k6, (hidden_size,), jnp.float32) * 0.01,
    }


def torchvision_backbone_forward(params, images, freeze_backbone=False):
    """Mirrors TorchVisionBackbone.forward. images: (B, C, H, W) NCHW float32."""
    B = images.shape[0]
    # Single NCHW -> NHWC transpose at module entry; NHWC / lane-dense after.
    x = jnp.transpose(images, (0, 2, 3, 1)).astype(jnp.float32)

    # conv1: 3x3 / stride 2 / pad 1 + ReLU   (space-to-depth matmul form).
    x1, hs1, ws1 = _prep_conv_input(x, CIN1_PAD)
    w1, b1 = _prep_conv_weight(params["conv1_w"], params["conv1_b"],
                               CIN1_PAD, C1_PAD)
    ho1, wo1 = hs1 - 1, ws1 - 1
    y1 = _conv_pallas(x1, w1, b1, ws=ws1, ho=ho1, wo=wo1, pool=False)
    # Drop alignment-padding rows and the Ws-wrap garbage column
    #   -> NHWC conv1 feature map (B, Ho, Wo, C1_PAD).
    f1 = y1[:, :ho1 * ws1].reshape(B, ho1, ws1, C1_PAD)[:, :, :wo1, :]

    # conv2: 3x3 / stride 2 / pad 1 + ReLU, fused with the spatial mean-pool.
    x2, hs2, ws2 = _prep_conv_input(f1, C1_PAD)
    w2, b2 = _prep_conv_weight(params["conv2_w"], params["conv2_b"],
                               C1_PAD, C2_PAD)
    ho2, wo2 = hs2 - 1, ws2 - 1
    pooled = _conv_pallas(x2, w2, b2, ws=ws2, ho=ho2, wo=wo2, pool=True)
    pooled = pooled.reshape(B, C2_PAD)

    if freeze_backbone:
        pooled = jax.lax.stop_gradient(pooled)   # torch.no_grad() analogue

    # fc + tanh head (padded to 128 lanes, sliced back afterwards; padded
    # weight rows/cols are zero so the math is exact).
    hidden, c2 = params["fc_w"].shape
    w_fc = jnp.zeros((C2_PAD, H_PAD), jnp.float32).at[:c2, :hidden].set(
        jnp.transpose(params["fc_w"]).astype(jnp.float32))
    b_fc = jnp.zeros((1, H_PAD), jnp.float32).at[0, :hidden].set(
        params["fc_b"].astype(jnp.float32))
    out = _head_pallas(pooled, w_fc, b_fc)
    return out[:, :hidden]


def _reference_forward(params, images):
    """Pure-JAX f32 reference with identical semantics (for the self-check)."""
    def conv(x, w, b):
        y = jax.lax.conv_general_dilated(
            x, w, window_strides=(2, 2), padding=((1, 1), (1, 1)),
            dimension_numbers=("NCHW", "OIHW", "NCHW"))
        return jnp.maximum(y + b[None, :, None, None], 0.0)

    h = conv(images, params["conv1_w"], params["conv1_b"])
    h = conv(h, params["conv2_w"], params["conv2_b"])
    pooled = h.reshape(h.shape[0], h.shape[1], -1).mean(-1)
    return jnp.tanh(pooled @ params["fc_w"].T + params["fc_b"])


if __name__ == "__main__":
    key = jax.random.PRNGKey(0)
    pkey, xkey = jax.random.split(key)

    B, C, H, W = 2, 4, 16, 16
    hidden_size = 32
    params = init_params(pkey, in_ch=C, hidden_size=hidden_size)
    x = jax.random.normal(xkey, (B, C, H, W), jnp.float32)   # NCHW, like PyTorch

    out = torchvision_backbone_forward(params, x, freeze_backbone=False)
    out = jax.block_until_ready(out)

    assert out.shape == (B, hidden_size), out.shape
    assert out.dtype == jnp.float32
    assert bool(jnp.all(jnp.abs(out) <= 1.0))                # tanh range

    ref = jax.block_until_ready(_reference_forward(params, x))
    err = float(jnp.max(jnp.abs(out - ref)))
    assert err < 8e-2, f"max |pallas - reference| = {err}"   # bf16-matmul tolerance

    print("KERNEL_OK")
</pallas_src>

<mosaic_0001>
module attributes {stable_mosaic.version = 11 : i64} {
  func.func @_conv2x2_relu_kernel(%arg0: i32, %arg1: memref<1x88x128xbf16, #tpu.memory_space<vmem>>, %arg2: memref<4x128x128xbf16, #tpu.memory_space<vmem>>, %arg3: memref<1x128xf32, #tpu.memory_space<vmem>>, %arg4: memref<1x72x128xbf16, #tpu.memory_space<vmem>>) attributes {dimension_semantics = [#tpu.dimension_semantics<parallel>], iteration_bounds = array<i64: 2>, scalar_prefetch = 0 : i64, scratch_operands = 0 : i64, tpu.core_type = #tpu.core_type<tc>, window_params = [{transform_indices = @transform_0, window_bounds = array<i64: 1, 88, 128>}, {pipeline_mode = #tpu.pipeline_mode<synchronous>, transform_indices = @transform_1, window_bounds = array<i64: 4, 128, 128>}, {pipeline_mode = #tpu.pipeline_mode<synchronous>, transform_indices = @transform_2, window_bounds = array<i64: 1, 128>}, {transform_indices = @transform_3, window_bounds = array<i64: 1, 72, 128>}]} {
    %c0 = arith.constant 0 : index
    %c0_0 = arith.constant 0 : index
    %c0_1 = arith.constant 0 : index
    %0 = vector.load %arg1[%c0, %c0_0, %c0_1] : memref<1x88x128xbf16, #tpu.memory_space<vmem>>, vector<1x72x128xbf16>
    %1 = vector.shape_cast %0 : vector<1x72x128xbf16> to vector<72x128xbf16>
    %c0_2 = arith.constant 0 : index
    %c0_3 = arith.constant 0 : index
    %c0_4 = arith.constant 0 : index
    %2 = vector.load %arg2[%c0_2, %c0_3, %c0_4] : memref<4x128x128xbf16, #tpu.memory_space<vmem>>, vector<1x128x128xbf16>
    %3 = vector.shape_cast %2 : vector<1x128x128xbf16> to vector<128x128xbf16>
    %cst = arith.constant dense<0.000000e+00> : vector<72x128xf32>
    %4 = tpu.matmul %1, %3, %cst {dimension_numbers = #tpu.dot_dimension_numbers<[1], [0], [0], [1], [0, 0, 1, 1], [], []>} : vector<72x128xbf16>, vector<128x128xbf16>, vector<72x128xf32> -> vector<72x128xf32>
    %c0_5 = arith.constant 0 : index
    %c1 = arith.constant 1 : index
    %c0_6 = arith.constant 0 : index
    %5 = vector.load %arg1[%c0_5, %c1, %c0_6] : memref<1x88x128xbf16, #tpu.memory_space<vmem>>, vector<1x72x128xbf16>
    %6 = vector.shape_cast %5 : vector<1x72x128xbf16> to vector<72x128xbf16>
    %c1_7 = arith.constant 1 : index
    %c0_8 = arith.constant 0 : index
    %c0_9 = arith.constant 0 : index
    %7 = vector.load %arg2[%c1_7, %c0_8, %c0_9] : memref<4x128x128xbf16, #tpu.memory_space<vmem>>, vector<1x128x128xbf16>
    %8 = vector.shape_cast %7 : vector<1x128x128xbf16> to vector<128x128xbf16>
    %cst_10 = arith.constant dense<0.000000e+00> : vector<72x128xf32>
    %9 = tpu.matmul %6, %8, %cst_10 {dimension_numbers = #tpu.dot_dimension_numbers<[1], [0], [0], [1], [0, 0, 1, 1], [], []>} : vector<72x128xbf16>, vector<128x128xbf16>, vector<72x128xf32> -> vector<72x128xf32>
    %10 = arith.addf %4, %9 : vector<72x128xf32>
    %c0_11 = arith.constant 0 : index
    %c9 = arith.constant 9 : index
    %c0_12 = arith.constant 0 : index
    %11 = vector.load %arg1[%c0_11, %c9, %c0_12] : memref<1x88x128xbf16, #tpu.memory_space<vmem>>, vector<1x72x128xbf16>
    %12 = vector.shape_cast %11 : vector<1x72x128xbf16> to vector<72x128xbf16>
    %c2 = arith.constant 2 : index
    %c0_13 = arith.constant 0 : index
    %c0_14 = arith.constant 0 : index
    %13 = vector.load %arg2[%c2, %c0_13, %c0_14] : memref<4x128x128xbf16, #tpu.memory_space<vmem>>, vector<1x128x128xbf16>
    %14 = vector.shape_cast %13 : vector<1x128x128xbf16> to vector<128x128xbf16>
    %cst_15 = arith.constant dense<0.000000e+00> : vector<72x128xf32>
    %15 = tpu.matmul %12, %14, %cst_15 {dimension_numbers = #tpu.dot_dimension_numbers<[1], [0], [0], [1], [0, 0, 1, 1], [], []>} : vector<72x128xbf16>, vector<128x128xbf16>, vector<72x128xf32> -> vector<72x128xf32>
    %16 = arith.addf %10, %15 : vector<72x128xf32>
    %c0_16 = arith.constant 0 : index
    %c10 = arith.constant 10 : index
    %c0_17 = arith.constant 0 : index
    %17 = vector.load %arg1[%c0_16, %c10, %c0_17] : memref<1x88x128xbf16, #tpu.memory_space<vmem>>, vector<1x72x128xbf16>
    %18 = vector.shape_cast %17 : vector<1x72x128xbf16> to vector<72x128xbf16>
    %c3 = arith.constant 3 : index
    %c0_18 = arith.constant 0 : index
    %c0_19 = arith.constant 0 : index
    %19 = vector.load %arg2[%c3, %c0_18, %c0_19] : memref<4x128x128xbf16, #tpu.memory_space<vmem>>, vector<1x128x128xbf16>
    %20 = vector.shape_cast %19 : vector<1x128x128xbf16> to vector<128x128xbf16>
    %cst_20 = arith.constant dense<0.000000e+00> : vector<72x128xf32>
    %21 = tpu.matmul %18, %20, %cst_20 {dimension_numbers = #tpu.dot_dimension_numbers<[1], [0], [0], [1], [0, 0, 1, 1], [], []>} : vector<72x128xbf16>, vector<128x128xbf16>, vector<72x128xf32> -> vector<72x128xf32>
    %22 = arith.addf %16, %21 : vector<72x128xf32>
    %c0_21 = arith.constant 0 : index
    %c0_22 = arith.constant 0 : index
    %23 = vector.load %arg3[%c0_21, %c0_22] : memref<1x128xf32, #tpu.memory_space<vmem>>, vector<1x128xf32>
    %24 = vector.broadcast %23 : vector<1x128xf32> to vector<72x128xf32>
    %25 = arith.addf %22, %24 : vector<72x128xf32>
    %cst_23 = arith.constant 0.000000e+00 : f32
    %26 = vector.broadcast %cst_23 : f32 to vector<72x128xf32>
    %27 = arith.maximumf %25, %26 : vector<72x128xf32>
    %28 = arith.truncf %27 : vector<72x128xf32> to vector<72x128xbf16>
    %c0_24 = arith.constant 0 : index
    %c0_25 = arith.constant 0 : index
    %c0_26 = arith.constant 0 : index
    %29 = vector.load %arg4[%c0_24, %c0_25, %c0_26] : memref<1x72x128xbf16, #tpu.memory_space<vmem>>, vector<1x72x128xbf16>
    %30 = vector.shape_cast %29 : vector<1x72x128xbf16> to vector<72x128xbf16>
    %31 = vector.shape_cast %28 : vector<72x128xbf16> to vector<1x72x128xbf16>
    tpu.vector_store %arg4[%c0_24, %c0_25, %c0_26], %31 {strides = array<i32>} : memref<1x72x128xbf16, #tpu.memory_space<vmem>>, vector<1x72x128xbf16>,
    return
  }
  func.func @transform_0(%arg0: i32) -> (i32, i32, i32) {
    %c0_i32 = arith.constant 0 : i32
    %c0_i32_0 = arith.constant 0 : i32
    %c0_i32_1 = arith.constant 0 : i32
    return %arg0, %c0_i32, %c0_i32_0 : i32, i32, i32
  }
  func.func @transform_1(%arg0: i32) -> (i32, i32, i32) {
    %c0_i32 = arith.constant 0 : i32
    %c0_i32_0 = arith.constant 0 : i32
    %c0_i32_1 = arith.constant 0 : i32
    %c0_i32_2 = arith.constant 0 : i32
    return %c0_i32, %c0_i32_0, %c0_i32_1 : i32, i32, i32
  }
  func.func @transform_2(%arg0: i32) -> (i32, i32) {
    %c0_i32 = arith.constant 0 : i32
    %c0_i32_0 = arith.constant 0 : i32
    %c0_i32_1 = arith.constant 0 : i32
    return %c0_i32, %c0_i32_0 : i32, i32
  }
  func.func @transform_3(%arg0: i32) -> (i32, i32, i32) {
    %c0_i32 = arith.constant 0 : i32
    %c0_i32_0 = arith.constant 0 : i32
    %c0_i32_1 = arith.constant 0 : i32
    return %arg0, %c0_i32, %c0_i32_0 : i32, i32, i32
  }
}

</mosaic_0001>

<bundles_post_ra>
// kernel: tpu_custom_call.1
= control target key start
LH: loop header
LB: loop body
LE: loop exit
PB: predicated region body
PF: predicated region fallthrough
CT: control target
= control target key end

     0   :  { %8 = vsyncpa [#allocation3], 0  ;;  %s2039_s0 = inlined_call_operand.hbm [shape: bf16[2,88,128], index: 0, kind: input, shape index: {}]   ;;  %s2040_s1 = inlined_call_operand.hbm [shape: bf16[4,128,128], index: 1, kind: input, shape index: {}]   ;;  %s2041_s2 = inlined_call_operand.vmem [shape: f32[1,128], index: 2, kind: input, shape index: {}]   ;;  %s2042_s3 = inlined_call_operand.hbm [shape: bf16[2,72,128], index: 3, kind: output, shape index: {}]  }
   0x1   :  { %10 = vsyncpa [#allocation3 + $0x1], 0 }
   0x2   :  { %11 = vsyncpa [#allocation6], 0 }
   0x3   :  { %12 = vsyncpa [#allocation4], 0 }
   0x4   :  { %14 = vsyncpa [#allocation4 + $0x1], 0  ;;  %s1685_s12 = smov 0   ;;  %s1687_s13 = smov 0  }
   0x5   :  { %s1689_s14 = smov 0   ;;  %s1691_s15 = smov 0  }
   0x6 LB: > { %s1706_s16 = sadd.s32 4294967295, %s1654_s15   ;;  %s1122_s17 = sadd.s32 4294967294, %s1654_s15   ;;  %s1654_s15 = sphi %s1691_s15, %s2062_s15   ;;  %s1650_s14 = sphi %s1689_s14, %s2061_s14   ;;  %s1646_s13 = sphi %s1687_s13, %s2060_s13   ;;  %s1642_s12 = sphi %s1685_s12, %s2059_s12  }
   0x7   : > { %p40_p0 = scmp.ne.s32.totalorder %s1646_s13, %s1642_s12  ;;  %p2043_p1 = scmp.eq.s32.totalorder %s1706_s16, 0 }
   0x8   : > { %p112_p3 = scmp.eq.s32.totalorder %s1122_s17, 1  ;;  %p1123_p5 = scmp.ge.s32.totalorder %s1654_s15, 1 }
   0x9   : > { %p1715_p4 = por %p2043_p1, %p40_p0  ;;  %p119_p7 = scmp.lt.s32.totalorder %s1654_s15, 3 }
   0xa   : > { %p1720_p6 = por %p112_p3, %p40_p0  ;;  %s1656_s21 = smov [#allocation5]  }
   0xb   : > { %s2046_s18 = scalar_select %p1715_p4, 1, 0 }
   0xc   : > { %s2047_s19 = scalar_select %p1720_p6, 1, 0 }
   0xd   : > { %p1725_p8 = pnand %p1123_p5, %p119_p7  ;;  %s131_s22 = sshll.u32 %s1656_s21, 4  ;;  %s1729_s22 = int_to_ptr.vmem [resolvable:$true] %s131_s22 }
   0xe   : > { %s1741_s24 = sadd.s32 1, %s1654_s15   ;;  %s27_s25 = sadd.s32 1, %s1650_s14 }
   0xf   : > { %s2048_s20 = scalar_select %p1725_p8, 1, 0 }
  0x10   : > { %p1427_p9 = pneg %p1725_p8  ;;  %s24_s26 = ssub.s32 %s1654_s15, %s1741_s24 }
  0x11   : > { %s1526_s29 = scalar_lea.hbm %s2040_s1, 4096 }
  0x12   : > { %p1736_p11 = pnand %p1427_p9, %p2043_p1  ;;  %p1527_p12 = scmp.ne.s32.totalorder %s2040_s1, %s1526_s29 }
  0x13   : > { %p1533_p5 = scmp.lt.u32.totalorder %s1526_s29, %s2040_s1 }
  0x14   : > { %p1528_p13 = pneg %p1736_p11 }
  0x16   : > { %p1529_p0 = pnand %p1528_p13, %p1527_p12 }
  0x18   : > { %p1530_p3 = pneg %p1529_p0 }
  0x1a   : > { %p1535_p7 = pnand %p1533_p5, %p1530_p3 }
  0x1c   : > { %1538 = shalt.err (!%p1535_p7)
}
  0x1d   : > { %s1539_s7 = scalar_lea.vmem %s1729_s22, 4096  ;;  %p1547_p2 = scmp.lt.s32.totalorder %s1729_s22, %s1729_s22 }
  0x1e   : > { %p1540_p9 = scmp.ne.s32.totalorder %s1729_s22, %s1539_s7  ;;  %p1548_p6 = scmp.lt.s32.totalorder %s1539_s7, %s1539_s7 }
  0x20   : > { %p1542_p10 = pnand %p1540_p9, %p1528_p13  ;;  %p1549_p4 = por %p1548_p6, %p1547_p2 }
  0x22   : > { %p1543_p1 = pneg %p1542_p10 }
  0x24   : > { %p1550_p8 = pnand %p1549_p4, %p1543_p1 }
  0x26   : > { %1553 = shalt.err (!%p1550_p8)
}
  0x27   : > { %s1657_s8 = smov 64   ;;  %s1658_s9 = smov 4  }
  0x28   : > { %1430 = dma.hbm_to_vmem [thread:$0]  (!%p1736_p11), %s2040_s1, 4096, %s1729_s22, [#allocation6], %s1657_s8, %s1657_s8, %s1658_s9  }
  0x29   : > { %p25_p1 = scmp.eq.s32.totalorder %s24_s26, 0  ;;  %p34_p2 = scmp.ne.s32.totalorder %s1650_s14, %s1646_s13 }
  0x2a   : > { %p35_p4 = scmp.eq.s32.totalorder %s1654_s15, 0  ;;  %p1440_p6 = scmp.lt.s32.totalorder %s1654_s15, 2 }
  0x2b   : > { %s1775_s17 = scalar_select %p25_p1, %s1650_s14, %s27_s25  }
  0x2c   : > { %p36_p8 = por %p35_p4, %p34_p2  ;;  %p2050_p10 = scmp.eq.s32.totalorder %s1706_s16, 1 }
  0x2d   : > { %s148_s23 = sand.u32 1, %s1650_s14   ;;  %s1415_s27 = smul.u32 704, %s1654_s15 }
  0x2e   : > { %p1779_p12 = por %p2050_p10, %p34_p2  ;;  %s1414_s28 = smul.u32 44, %s148_s23 }
  0x2f   : > { %p1785_p13 = pnand %p1440_p6, %p36_p8  ;;  %s1792_s25 = scalar_lea.hbm %s2039_s0, %s1415_s27 }
  0x30   : > { %s152_s30 = scalar_lea.vmem [#allocation2], %s1414_s28  ;;  %s1796_s5 = scalar_lea.sflag [#allocation3], %s148_s23 }
  0x31   : > { %s159_s4 = sshll.u32 %s152_s30, 4  ;;  %s1554_s6 = scalar_lea.hbm %s1792_s25, 704  ;;  %s1794_s4 = int_to_ptr.vmem [resolvable:$true] %s159_s4 }
  0x32   : > { %p1555_p11 = scmp.ne.s32.totalorder %s1792_s25, %s1554_s6  ;;  %p1556_p0 = pneg %p1785_p13 }
  0x33   : > { %s1559_s11 = scalar_lea.hbm %s2039_s0, 1408  ;;  %p1560_p7 = scmp.lt.u32.totalorder %s1792_s25, %s2039_s0 }
  0x34   : > { %p1557_p3 = pnand %p1556_p0, %p1555_p11  ;;  %p1561_p9 = scmp.lt.u32.totalorder %s1559_s11, %s1554_s6 }
  0x35   : > { %p1563_p2 = scmp.lt.u32.totalorder %s1554_s6, %s1792_s25 }
  0x36   : > { %p1558_p5 = pneg %p1557_p3  ;;  %p1562_p1 = por %p1561_p9, %p1560_p7 }
  0x38   : > { %p1564_p4 = por %p1563_p2, %p1562_p1 }
  0x3a   : > { %p1565_p6 = pnand %p1564_p4, %p1558_p5 }
  0x3c   : > { %1568 = shalt.err (!%p1565_p6)
}
  0x3d   : > { %s1569_s23 = scalar_lea.vmem %s1794_s4, 704  ;;  %s1659_s28 = smov [#allocation2]  }
  0x3e   : > { %p1570_p8 = scmp.ne.s32.totalorder %s1794_s4, %s1569_s23  ;;  %s1574_s26 = sshll.u32 %s1659_s28, 4  ;;  %s1575_s26 = int_to_ptr.vmem [resolvable:$false] %s1574_s26 }
  0x3f   : > { %s1576_s30 = scalar_lea.vmem %s1575_s26, 1408  ;;  %p1577_p3 = scmp.lt.s32.totalorder %s1794_s4, %s1575_s26 }
  0x40   : > { %p1572_p10 = pnand %p1570_p8, %p1556_p0  ;;  %p1578_p7 = scmp.lt.s32.totalorder %s1576_s30, %s1569_s23 }
  0x42   : > { %p1573_p11 = pneg %p1572_p10  ;;  %p1579_p9 = por %p1578_p7, %p1577_p3 }
  0x44   : > { %p1580_p1 = pnand %p1579_p9, %p1573_p11 }
  0x46   : > { %1583 = shalt.err (!%p1580_p1)
}
  0x47   : > { %1434 = dma.hbm_to_vmem [thread:$0]  (!%p1785_p13), %s1792_s25, 704, %s1794_s4, %s1796_s5, %s1657_s8, %s1657_s8, %s1658_s9  }
  0x48   : > { %p2053_p0 = scmp.ne.s32.totalorder %s2048_s20, 0 }
  0x49   : > { %s1830_s6 = sand.u32 (!%p2053_p0), 1, %s1646_s13   ;;  %p2054_p5 = scmp.ne.s32.totalorder (!%p2053_p0), %s2046_s18, 0 }
  0x4a   : > { %171 = sbr.rel (%p2053_p0) target bundleno = 428 (0x1ac), region = 32  ;;  %s174_s10 = scalar_lea.sflag (!%p2053_p0), [#allocation3], %s1830_s6 }
  0x4b   : > { %s1416_s7 = smul.u32 (!%p2053_p0), 44, %s1830_s6 }
  0x4d   : > { %s1834_s11 = scalar_lea.vmem (!%p2053_p0), [#allocation2], %s1416_s7 }
  0x51   : > { %1629 = dma.done.wait (%p2054_p5), %s174_s10, 704  }
  0x52   : > { %1631 = vsyncadd (%p2054_p5), %s174_s10, 4294966592  ;;  %p2055_p13 = scmp.eq.s32.totalorder %s1706_s16, 0 }
  0x54   : > { %1633 = dma.done.wait (%p2055_p13), [#allocation6], 4096   ;;  %p2056_p2 = pmov %p2055_p13 }
  0x55   : > { %v1660_v0 = vmov 0.0   ;;  %vm1661_vm0 = vmmov 0   ;;  %v1482_v1 = vld [vmem:[#allocation5 + $0x40] sm:$0xff]   ;;  %v1484_v3 = vld [vmem:[#allocation5 + $0x48] sm:$0xff]   ;;  %v1486_v5 = vld [vmem:[#allocation5 + $0x50] sm:$0xff]   ;;  %vm810_vm2 = vcmask 1046528  }
  0x56   : > { %1635 = vsyncadd (%p2056_p2), [#allocation6], 4294963200  ;;  %1270 = vmatprep.subr.bf16.mxu0 %v1660_v0  ;;  %1306 = vmatprep.subr.bf16.mxu1 %v1660_v0  ;;  %v1483_v2 = vld [vmem:[#allocation5] sm:$0xff]   ;;  %v1485_v4 = vld [vmem:[#allocation5 + $0x8] sm:$0xff]   ;;  %vm273_vm1 = vsmask.f32 7424 }
  0x57   : > { %1286 = vmatprep.mubr.msk.bf16.mxu0 %vm1661_vm0, %v1660_v0  ;;  %1322 = vmatprep.mubr.msk.bf16.mxu1 %vm1661_vm0, %v1660_v0  ;;  %v1487_v6 = vld [vmem:[#allocation5 + $0x10] sm:$0xff]   ;;  %v1488_v7 = vld [vmem:[#allocation5 + $0x58] sm:$0xff]   ;;  %v1490_v9 = vld [vmem:[#allocation5 + $0x60] sm:$0xff]   ;;  %s1417_s8 = smul.u32 36, %s1830_s6  ;;  %s1026_s22 = scalar_lea.sflag [#allocation4], %s1830_s6 }
  0x58   : > { %1271 = vmatpush3.bf16.msra.mxu0 %v1482_v1  ;;  %1307 = vmatpush3.bf16.msra.mxu1 %v1483_v2  ;;  %v1489_v8 = vld [vmem:[#allocation5 + $0x18] sm:$0xff]   ;;  %v1491_v10 = vld [vmem:[#allocation5 + $0x20] sm:$0xff]   ;;  %v1492_v11 = vld [vmem:[#allocation5 + $0x68] sm:$0xff]   ;;  %s1418_s25 = smul.u32 576, %s1706_s16  ;;  %s1662_s16 = smov [#allocation7]  }
  0x59   : > { %1272 = vmatprep.subr.bf16.mxu0 %v1660_v0  ;;  %1308 = vmatprep.subr.bf16.mxu1 %v1660_v0  ;;  %v1498_v12 = vld [vmem:[%s1834_s11] sm:$0xff]   ;;  %v1499_v13 = vld [vmem:[%s1834_s11 + $0x8] sm:$0xff]   ;;  %v1503_v24 = vld [vmem:[%s1834_s11 + $0x10] sm:$0xff]   ;;  %s1969_s9 = scalar_lea.vmem [#allocation7], %s1417_s8  ;;  %s1588_s28 = sshll.u32 %s1662_s16, 4  ;;  %s1589_s28 = int_to_ptr.vmem [resolvable:$false] %s1588_s28 }
  0x5a   : > { %v1493_v14 = vld [vmem:[#allocation5 + $0x28] sm:$0xff]   ;;  %v277_v15 = vshll.u32 %v1498_v12, 16  ;;  %v1494_v16 = vld [vmem:[#allocation5 + $0x70] sm:$0xff]   ;;  %v275_v17 = vshrl.u32 %v1498_v12, 16  ;;  %v282_v19 = vshll.u32 %v1499_v13, 16  ;;  %v1496_v21 = vld [vmem:[#allocation5 + $0x78] sm:$0xff]   ;;  %s1994_s27 = scalar_lea.hbm %s2042_s3, %s1418_s25 }
  0x5b   : > { %v1495_v20 = vld [vmem:[#allocation5 + $0x30] sm:$0xff]   ;;  %v1497_v25 = vld [vmem:[#allocation5 + $0x38] sm:$0xff]   ;;  %v1500_v27 = vld [vmem:[#allocation5 + $0x80] sm:$0xff]   ;;  %v286_v28 = vshrl.u32 %v1499_v13, 16  ;;  %v290_v29 = vshll.u32 %v1503_v24, 16  ;;  %v294_v39 = vshrl.u32 %v1503_v24, 16 }
  0x5c   : > { %1273 = vmatpush3.bf16.msra.mxu0 %v1484_v3  ;;  %1309 = vmatpush3.bf16.msra.mxu1 %v1485_v4  ;;  %v279_v18 = vrot.slane %v277_v15, 1  ;;  %v284_v23 = vrot.slane %v282_v19, 1  ;;  %v1501_v30 = vld [vmem:[#allocation5 + $0xc0] sm:$0xff]   ;;  %v1502_v31 = vld [vmem:[#allocation5 + $0x88] sm:$0xff]   ;;  %v1505_v36 = vld [vmem:[#allocation5 + $0x90] sm:$0xff]   ;;  %s1039_s29 = sshll.u32 %s1969_s9, 4  ;;  %s1989_s29 = int_to_ptr.vmem [resolvable:$true] %s1039_s29 }
  0x5d   : > { %1274 = vmatprep.subr.bf16.mxu0 %v1660_v0  ;;  %1310 = vmatprep.subr.bf16.mxu1 %v1660_v0  ;;  %v292_v33 = vrot.slane %v290_v29, 1  ;;  %v1871_v34 = vld [vmem:[%s1834_s11 + $0x18] sm:$0xff]   ;;  %v1882_v41 = vld [vmem:[%s1834_s11 + $0x20] sm:$0xf]  ;;  %v230_v42 = vld [vmem:[%s1834_s11 + $0x24] sm:$0x1]  ;;  %p1591_p10 = scmp.lt.s32.totalorder %s1989_s29, %s1589_s28 }
  0x5e   : > { %v280_v22 = vor.u32 %v279_v18, %v275_v17  ;;  %v288_v32 = vor.u32 %v286_v28, %v284_v23  ;;  %v1504_v35 = vld [vmem:[#allocation5 + $0xc8] sm:$0xff]   ;;  %v1506_v37 = vld [vmem:[#allocation5 + $0xd0] sm:$0xff]   ;;  %v298_v40 = vshll.u32 %v1871_v34, 16  ;;  %v1508_v45 = vld [vmem:[#allocation5 + $0x98] sm:$0xff]   ;;  %v1133_v46 = vcombine.low %v1882_v41, %v230_v42  ;;  %s1584_s23 = scalar_lea.vmem %s1989_s29, 576  ;;  %s1590_s26 = scalar_lea.vmem %s1589_s28, 1152 }
  0x5f   : > { %v296_v43 = vor.u32 %v294_v39, %v292_v33  ;;  %v1509_v47 = vld [vmem:[#allocation5 + $0xd8] sm:$0xff]   ;;  %v1510_v49 = vld [vmem:[#allocation5 + $0xa0] sm:$0xff]   ;;  %v302_v50 = vshrl.u32 %v1871_v34, 16  ;;  %v1513_v55 = vld [vmem:[#allocation5 + $0xa8] sm:$0xff]   ;;  %p1585_p4 = scmp.ne.s32.totalorder %s1989_s29, %s1584_s23  ;;  %p1592_p11 = scmp.lt.s32.totalorder %s1590_s26, %s1584_s23 }
  0x60   : > { %1275 = vmatpush3.bf16.msra.mxu0 %v1486_v5  ;;  %1311 = vmatpush3.bf16.msra.mxu1 %v1487_v6  ;;  %v285_v26 = vsel %vm273_vm1, %v280_v22, %v284_v23  ;;  %v293_v38 = vsel %vm273_vm1, %v288_v32, %v292_v33  ;;  %v300_v44 = vrot.slane %v298_v40, 1  ;;  %v306_v51 = vshll.u32 %v1133_v46, 16  ;;  %v1511_v52 = vld [vmem:[#allocation5 + $0xe0] sm:$0xff]   ;;  %v564_v56 = vld [vmem:[%s1834_s11 + $0x4] sm:$0xf]  ;;  %v1515_v61 = vld [vmem:[#allocation5 + $0xb0] sm:$0xff]  }
  0x61   : > { %1276 = vmatprep.subr.bf16.mxu0 %v1660_v0  ;;  %1312 = vmatprep.subr.bf16.mxu1 %v1660_v0  ;;  %v565_v57 = vld [vmem:[%s1834_s11 + $0x8] sm:$0xf]  ;;  %v1514_v58 = vld [vmem:[#allocation5 + $0xe8] sm:$0xff]   ;;  %v310_v63 = vshrl.u32 %v1133_v46, 16  ;;  %v1521_v1 = vld [vmem:[%s1834_s11 + $0xc] sm:$0xff]   ;;  %p1586_p6 = pnand %p1585_p4, %p1779_p12  ;;  %p1593_p3 = por %p1592_p11, %p1591_p10 }
  0x62   : > { %v301_v48 = vsel %vm273_vm1, %v296_v43, %v300_v44  ;;  %v304_v53 = vor.u32 %v302_v50, %v300_v44  ;;  %v308_v54 = vrot.slane %v306_v51, 1  ;;  %v1151_v60 = vcombine.low %v564_v56, %v565_v57  ;;  %v1517_v62 = vld [vmem:[#allocation5 + $0xf0] sm:$0xff]   ;;  %v1518_v3 = vld [vmem:[#allocation5 + $0xb8] sm:$0xff]  }
  0x63   : > { %v1519_v4 = vld [vmem:[#allocation5 + $0xf8] sm:$0xff]   ;;  %v628_v18 = vshrl.u32 %v1521_v1, 16  ;;  %v1524_v23 = vld [vmem:[%s1834_s11 + $0x1c] sm:$0xff]   ;;  %p1587_p8 = pneg %p1586_p6 }
  0x64   : > { %1277 = vmatpush3.bf16.msra.mxu0 %v1488_v7  ;;  %1313 = vmatpush3.bf16.msra.mxu1 %v1489_v8  ;;  %v309_v59 = vsel %vm273_vm1, %v304_v53, %v308_v54  ;;  %v619_v2 = vshll.u32 %v1151_v60, 16  ;;  %v789_v5 = vld [vmem:[%s1834_s11 + $0x4] sm:$0xe]  ;;  %v312_v6 = vor.u32 %v310_v63, %v308_v54  ;;  %v1142_v7 = vcombine.low %v1882_v41, %v1882_v41 }
  0x65   : > { %1278 = vmatprep.subr.bf16.mxu0 %v1660_v0  ;;  %1314 = vmatprep.subr.bf16.mxu1 %v1660_v0  ;;  %v617_v8 = vshrl.u32 %v1151_v60, 16  ;;  %v816_v32 = vrot.slane %v1524_v23, 1  ;;  %p1594_p7 = pnand %p1593_p3, %p1587_p8 }
  0x68   : > { %1279 = vmatpush3.bf16.msra.mxu0 %v1490_v9  ;;  %1315 = vmatpush3.bf16.msra.mxu1 %v1491_v10  ;;  %v621_v9 = vrot.slane %v619_v2, 1  ;;  %v624_v10 = vshll.u32 %v1521_v1, 16 }
  0x69   : > { %1280 = vmatprep.subr.bf16.mxu0 %v1660_v0  ;;  %1316 = vmatprep.subr.bf16.mxu1 %v1660_v0 }
  0x6c   : > { %1281 = vmatpush3.bf16.msra.mxu0 %v1492_v11  ;;  %1317 = vmatpush3.bf16.msra.mxu1 %v1493_v14  ;;  %v1164_v11 = vcombine.low %v789_v5, %v565_v57  ;;  %v1523_v14 = vld [vmem:[%s1834_s11 + $0x14] sm:$0xff]  }
  0x6d   : > { %1282 = vmatprep.subr.bf16.mxu0 %v1660_v0  ;;  %1318 = vmatprep.subr.bf16.mxu1 %v1660_v0  ;;  %v632_v19 = vshll.u32 %v1523_v14, 16 }
  0x6e   : > { %v811_v15 = vrot.slane %v1164_v11, 1 }
  0x6f   : > { %v634_v22 = vrot.slane %v632_v19, 1 }
  0x70   : > { %1283 = vmatpush3.bf16.msra.mxu0 %v1494_v16  ;;  %1319 = vmatpush3.bf16.msra.mxu1 %v1495_v20  ;;  %v812_v16 = vrot.slane %v1521_v1, 1 }
  0x71   : > { %1284 = vmatprep.subr.bf16.mxu0 %v1660_v0  ;;  %1320 = vmatprep.subr.bf16.mxu1 %v1660_v0 }
  0x72   : > { %v813_v20 = vsel %vm810_vm2, %v811_v15, %v812_v16 }
  0x74   : > { %1285 = vmatpush3.bf16.msra.mxu0 %v1496_v21  ;;  %1321 = vmatpush3.bf16.msra.mxu1 %v1497_v25 }
  0x75   : > { %1342 = vmatprep.subr.bf16.mxu0 %v1660_v0  ;;  %1378 = vmatprep.subr.bf16.mxu1 %v1660_v0 }
  0x77   : > { %1287 = vmatmul.mubr.bf16.vlgmr.msra.gmra.mrb[0].mxu0 %v285_v26  ;;  %1323 = vmatmul.mubr.bf16.vlgmr.msra.gmra.mrb[0].mxu1 %v1498_v12  ;;  %v622_v12 = vor.u32 %v621_v9, %v617_v8  ;;  %v636_v26 = vshrl.u32 %v1523_v14, 16 }
  0x78   : > { %1343 = vmatpush3.bf16.msra.mxu0 %v1500_v27  ;;  %1379 = vmatpush3.bf16.msra.mxu1 %v1501_v30  ;;  %v640_v27 = vshll.u32 %v1524_v23, 16 }
  0x79   : > { %1344 = vmatprep.subr.bf16.mxu0 %v1660_v0  ;;  %1290 = vmatprep.mubr.msk.bf16.mxu0 %vm1661_vm0, %v1660_v0  ;;  %v638_v29 = vor.u32 %v636_v26, %v634_v22 }
  0x7a   : > { %1326 = vmatprep.mubr.msk.bf16.mxu1 %vm1661_vm0, %v1660_v0  ;;  %1380 = vmatprep.subr.bf16.mxu1 %v1660_v0  ;;  %v642_v30 = vrot.slane %v640_v27, 1 }
  0x7c   : > { %1345 = vmatpush3.bf16.msra.mxu0 %v1502_v31  ;;  %1381 = vmatpush3.bf16.msra.mxu1 %v1504_v35  ;;  %v1525_v31 = vld [vmem:[%s1834_s11 + $0x24] sm:$0x1f]   ;;  %v643_v33 = vsel %vm273_vm1, %v638_v29, %v642_v30 }
  0x7d   : > { %1346 = vmatprep.subr.bf16.mxu0 %v1660_v0  ;;  %1382 = vmatprep.subr.bf16.mxu1 %v1660_v0  ;;  %v648_v35 = vshll.u32 %v1525_v31, 16  ;;  %v818_v39 = vrot.slane %v1525_v31, 1  ;;  %v652_v42 = vshrl.u32 %v1525_v31, 16 }
  0x7f   : > { %1291 = vmatmul.mubr.bf16.gmra.mrb[4].mxu0 %v293_v38  ;;  %1327 = vmatmul.mubr.bf16.gmra.mrb[4].mxu1 %v1499_v13  ;;  %v626_v13 = vrot.slane %v624_v10, 1  ;;  %v650_v38 = vrot.slane %v648_v35, 1  ;;  %v819_v41 = vsel %vm810_vm2, %v816_v32, %v818_v39 }
  0x80   : > { %1347 = vmatpush3.bf16.msra.mxu0 %v1505_v36  ;;  %1383 = vmatpush3.bf16.msra.mxu1 %v1506_v37 }
  0x81   : > { %1294 = vmatprep.mubr.msk.bf16.mxu0 %vm1661_vm0, %v1660_v0  ;;  %1330 = vmatprep.mubr.msk.bf16.mxu1 %vm1661_vm0, %v1660_v0  ;;  %v627_v17 = vsel %vm273_vm1, %v622_v12, %v626_v13  ;;  %v630_v21 = vor.u32 %v628_v18, %v626_v13  ;;  %v654_v43 = vor.u32 %v652_v42, %v650_v38 }
  0x82   : > { %1348 = vmatprep.subr.bf16.mxu0 %v1660_v0  ;;  %1384 = vmatprep.subr.bf16.mxu1 %v1660_v0 }
  0x83   : > { %v635_v25 = vsel %vm273_vm1, %v630_v21, %v634_v22 }
  0x84   : > { %1349 = vmatpush3.bf16.msra.mxu0 %v1508_v45  ;;  %1385 = vmatpush3.bf16.msra.mxu1 %v1509_v47 }
  0x85   : > { %1350 = vmatprep.subr.bf16.mxu0 %v1660_v0  ;;  %1386 = vmatprep.subr.bf16.mxu1 %v1660_v0 }
  0x87   : > { %1295 = vmatmul.mubr.bf16.gmra.mrb[8].mxu0 %v301_v48  ;;  %1331 = vmatmul.mubr.bf16.gmra.mrb[8].mxu1 %v1503_v24  ;;  %v814_v24 = vrot.slane %v1523_v14, 1 }
  0x88   : > { %1351 = vmatpush3.bf16.msra.mxu0 %v1510_v49  ;;  %1298 = vmatprep.mubr.msk.bf16.mxu0 %vm1661_vm0, %v1660_v0 }
  0x89   : > { %1334 = vmatprep.mubr.msk.bf16.mxu1 %vm1661_vm0, %v1660_v0  ;;  %1387 = vmatpush3.bf16.msra.mxu1 %v1511_v52  ;;  %v815_v28 = vsel %vm810_vm2, %v812_v16, %v814_v24  ;;  %v817_v36 = vsel %vm810_vm2, %v814_v24, %v816_v32 }
  0x8a   : > { %1352 = vmatprep.subr.bf16.mxu0 %v1660_v0  ;;  %1388 = vmatprep.subr.bf16.mxu1 %v1660_v0 }
  0x8c   : > { %1353 = vmatpush3.bf16.msra.mxu0 %v1513_v55 }
  0x8d   : > { %1354 = vmatprep.subr.bf16.mxu0 %v1660_v0  ;;  %1389 = vmatpush3.bf16.msra.mxu1 %v1514_v58 }
  0x8e   : > { %1390 = vmatprep.subr.bf16.mxu1 %v1660_v0 }
  0x8f   : > { %1299 = vmatmul.mubr.bf16.gmra.mrb[12].mxu0 %v309_v59  ;;  %1335 = vmatmul.mubr.bf16.gmra.mrb[12].mxu1 %v1871_v34  ;;  %v644_v34 = vshrl.u32 %v1524_v23, 16 }
  0x90   : > { %1302 = vmatprep.mubr.msk.bf16.mxu0 %vm1661_vm0, %v1660_v0  ;;  %1338 = vmatprep.mubr.msk.bf16.mxu1 %vm1661_vm0, %v1660_v0 }
  0x91   : > { %1355 = vmatpush3.bf16.msra.mxu0 %v1515_v61  ;;  %1391 = vmatpush3.bf16.msra.mxu1 %v1517_v62  ;;  %v646_v37 = vor.u32 %v644_v34, %v642_v30 }
  0x92   : > { %1356 = vmatprep.subr.bf16.mxu0 %v1660_v0  ;;  %1392 = vmatprep.subr.bf16.mxu1 %v1660_v0 }
  0x93   : > { %v651_v40 = vsel %vm273_vm1, %v646_v37, %v650_v38 }
  0x95   : > { %1357 = vmatpush3.bf16.msra.mxu0 %v1518_v3  ;;  %1393 = vmatpush3.bf16.msra.mxu1 %v1519_v4 }
  0x97   : > { %1303 = vmatmul.mubr.bf16.gmra.mrb[16].mxu0 %v312_v6  ;;  %1339 = vmatmul.mubr.bf16.gmra.mrb[16].mxu1 %v1142_v7 }
  0x98   : > { %1358 = vmatprep.mubr.msk.bf16.mxu0 %vm1661_vm0, %v1660_v0  ;;  %1394 = vmatprep.mubr.msk.bf16.mxu1 %vm1661_vm0, %v1660_v0 }
  0x9f   : > { %1359 = vmatmul.mubr.bf16.vlgmr.msra.gmra.mrb[20].mxu0 %v627_v17  ;;  %1395 = vmatmul.mubr.bf16.vlgmr.msra.gmra.mrb[20].mxu1 %v813_v20 }
  0xa0   : > { %1362 = vmatprep.mubr.msk.bf16.mxu0 %vm1661_vm0, %v1660_v0  ;;  %1398 = vmatprep.mubr.msk.bf16.mxu1 %vm1661_vm0, %v1660_v0 }
  0xa7   : > { %1363 = vmatmul.mubr.bf16.gmra.mrb[24].mxu0 %v635_v25  ;;  %1399 = vmatmul.mubr.bf16.gmra.mrb[24].mxu1 %v815_v28 }
  0xa8   : > { %1366 = vmatprep.mubr.msk.bf16.mxu0 %vm1661_vm0, %v1660_v0  ;;  %1402 = vmatprep.mubr.msk.bf16.mxu1 %vm1661_vm0, %v1660_v0 }
  0xaf   : > { %1367 = vmatmul.mubr.bf16.gmra.mrb[28].mxu0 %v643_v33  ;;  %1403 = vmatmul.mubr.bf16.gmra.mrb[28].mxu1 %v817_v36  ;;  %v1964_v33 = vld [vmem:[%s2041_s2] ss:$0 sm:$0xff] }
  0xb0   : > { %1370 = vmatprep.mubr.msk.bf16.mxu0 %vm1661_vm0, %v1660_v0  ;;  %1406 = vmatprep.mubr.msk.bf16.mxu1 %vm1661_vm0, %v1660_v0 }
  0xb7   : > { %1371 = vmatmul.mubr.bf16.gmra.mrb[32].mxu0 %v651_v40  ;;  %1407 = vmatmul.mubr.bf16.gmra.mrb[32].mxu1 %v819_v41 }
  0xb8   : > { %1374 = vmatprep.mubr.msk.bf16.mxu0 %vm1661_vm0, %v1660_v0  ;;  %1410 = vmatprep.mubr.msk.bf16.mxu1 %vm1661_vm0, %v1660_v0 }
  0xbf   : > { %1375 = vmatmul.mubr.bf16.gmra.mrb[36].mxu0 %v654_v43  ;;  %1411 = vmatmul.mubr.bf16.gmra.mrb[36].mxu1 %v818_v39 }
 0x14a   : > { %v400_v44 = vpop.f32.mrb[0].mxu0  ;;  %v526_v45 = vpop.f32.mrb[0].mxu1 }
 0x14b   : > { %v1288_v46 = vpop.f32.mrb[1].mxu0  ;;  %v527_v47 = vadd.f32 %v526_v45, %v400_v44  ;;  %v1324_v48 = vpop.f32.mrb[1].mxu1 }
 0x14c   : > { %v403_v49 = vpop.f32.mrb[2].mxu0  ;;  %v529_v50 = vpop.f32.mrb[2].mxu1 }
 0x14d   : > { %v1289_v51 = vpop.f32.mrb[3].mxu0  ;;  %v530_v52 = vadd.f32 %v529_v50, %v403_v49  ;;  %v1325_v53 = vpop.f32.mrb[3].mxu1 }
 0x152   : > { %v408_v54 = vpop.f32.mrb[4].mxu0  ;;  %v534_v55 = vpop.f32.mrb[4].mxu1 }
 0x153   : > { %v1292_v56 = vpop.f32.mrb[5].mxu0  ;;  %v535_v57 = vadd.f32 %v534_v55, %v408_v54  ;;  %v1328_v58 = vpop.f32.mrb[5].mxu1 }
 0x154   : > { %v411_v59 = vpop.f32.mrb[6].mxu0  ;;  %v537_v0 = vpop.f32.mrb[6].mxu1 }
 0x155   : > { %v1293_v60 = vpop.f32.mrb[7].mxu0  ;;  %v538_v61 = vadd.f32 %v537_v0, %v411_v59  ;;  %v1329_v62 = vpop.f32.mrb[7].mxu1 }
 0x15a   : > { %v416_v63 = vpop.f32.mrb[8].mxu0  ;;  %v542_v1 = vpop.f32.mrb[8].mxu1 }
 0x15b   : > { %v1296_v2 = vpop.f32.mrb[9].mxu0  ;;  %v1951_v3 = vadd.f32 %v542_v1, %v416_v63  ;;  %v1332_v4 = vpop.f32.mrb[9].mxu1 }
 0x15c   : > { %v419_v5 = vpop.f32.mrb[10].mxu0  ;;  %v545_v6 = vpop.f32.mrb[10].mxu1 }
 0x15d   : > { %v1297_v7 = vpop.f32.mrb[11].mxu0  ;;  %v1953_v8 = vadd.f32 %v545_v6, %v419_v5  ;;  %v1333_v9 = vpop.f32.mrb[11].mxu1 }
 0x162   : > { %v424_v10 = vpop.f32.mrb[12].mxu0  ;;  %v550_v11 = vpop.f32.mrb[12].mxu1 }
 0x163   : > { %v1300_v12 = vpop.f32.mrb[13].mxu0  ;;  %v1955_v13 = vadd.f32 %v550_v11, %v424_v10  ;;  %v1336_v14 = vpop.f32.mrb[13].mxu1 }
 0x164   : > { %v427_v15 = vpop.f32.mrb[14].mxu0  ;;  %v553_v16 = vpop.f32.mrb[14].mxu1 }
 0x165   : > { %v1301_v17 = vpop.f32.mrb[15].mxu0  ;;  %v1957_v18 = vadd.f32 %v553_v16, %v427_v15  ;;  %v1337_v19 = vpop.f32.mrb[15].mxu1 }
 0x16a   : > { %v432_v20 = vpop.f32.mrb[16].mxu0  ;;  %v558_v21 = vpop.f32.mrb[16].mxu1 }
 0x16b   : > { %v1304_v22 = vpop.f32.mrb[17].mxu0  ;;  %v1959_v23 = vadd.f32 %v558_v21, %v432_v20  ;;  %v1340_v24 = vpop.f32.mrb[17].mxu1 }
 0x16c   : > { %v435_v25 = vpop.f32.mrb[18].mxu0  ;;  %v561_v26 = vpop.f32.mrb[18].mxu1 }
 0x16d   : > { %v1305_v27 = vpop.f32.mrb[19].mxu0  ;;  %v1341_v28 = vpop.f32.mrb[19].mxu1 }
 0x172   : > { %v742_v29 = vpop.f32.mrb[20].mxu0  ;;  %v907_v31 = vpop.f32.mrb[20].mxu1 }
 0x173   : > { %v780_v30 = vadd.f32 %v742_v29, %v527_v47  ;;  %v1360_v32 = vpop.f32.mrb[21].mxu0  ;;  %v1396_v34 = vpop.f32.mrb[21].mxu1 }
 0x174   : > { %v745_v35 = vpop.f32.mrb[22].mxu0  ;;  %v910_v38 = vpop.f32.mrb[22].mxu1 }
 0x175   : > { %v945_v36 = vadd.f32 %v907_v31, %v780_v30  ;;  %v781_v37 = vadd.f32 %v745_v35, %v530_v52  ;;  %v1361_v39 = vpop.f32.mrb[23].mxu0  ;;  %v1397_v40 = vpop.f32.mrb[23].mxu1 }
 0x177   : > { %v961_v41 = vadd.f32 %v1964_v33, %v945_v36  ;;  %v946_v42 = vadd.f32 %v910_v38, %v781_v37 }
 0x179   : > { %v962_v43 = vadd.f32 %v1964_v33, %v946_v42  ;;  %v970_v45 = vmax.f32 %v961_v41, 0.0 }
 0x17a   : > { %v750_v44 = vpop.f32.mrb[24].mxu0  ;;  %v915_v48 = vpop.f32.mrb[24].mxu1 }
 0x17b   : > { %v971_v46 = vmax.f32 %v962_v43, 0.0  ;;  %v782_v47 = vadd.f32 %v750_v44, %v535_v57  ;;  %v1364_v49 = vpop.f32.mrb[25].mxu0  ;;  %v1400_v50 = vpop.f32.mrb[25].mxu1 }
 0x17c   : > { %v753_v51 = vpop.f32.mrb[26].mxu0  ;;  %v918_v55 = vpop.f32.mrb[26].mxu1 }
 0x17d   : > { %v1198_v53 = vpack.c.bf16 %v971_v46, %v970_v45  ;;  %v947_v54 = vadd.f32 %v915_v48, %v782_v47  ;;  %v783_v52 = vadd.f32 %v753_v51, %v538_v61  ;;  %v1365_v56 = vpop.f32.mrb[27].mxu0  ;;  %v1401_v58 = vpop.f32.mrb[27].mxu1 }
 0x17f   : > { %1199 = vst [vmem:[%s1969_s9] sm:$0xff] %v1198_v53   ;;  %v963_v59 = vadd.f32 %v1964_v33, %v947_v54  ;;  %v948_v0 = vadd.f32 %v918_v55, %v783_v52 }
 0x181   : > { %v964_v57 = vadd.f32 %v1964_v33, %v948_v0  ;;  %v972_v62 = vmax.f32 %v963_v59, 0.0 }
 0x182   : > { %v758_v60 = vpop.f32.mrb[28].mxu0  ;;  %v923_v2 = vpop.f32.mrb[28].mxu1 }
 0x183   : > { %v973_v63 = vmax.f32 %v964_v57, 0.0  ;;  %v784_v1 = vadd.f32 %v758_v60, %v1951_v3  ;;  %v1368_v61 = vpop.f32.mrb[29].mxu0  ;;  %v1404_v4 = vpop.f32.mrb[29].mxu1 }
 0x184   : > { %v761_v5 = vpop.f32.mrb[30].mxu0  ;;  %v926_v10 = vpop.f32.mrb[30].mxu1 }
 0x185   : > { %v1203_v6 = vpack.c.bf16 %v973_v63, %v972_v62  ;;  %v949_v7 = vadd.f32 %v923_v2, %v784_v1  ;;  %v785_v9 = vadd.f32 %v761_v5, %v1953_v8  ;;  %v1369_v11 = vpop.f32.mrb[31].mxu0  ;;  %v1405_v12 = vpop.f32.mrb[31].mxu1 }
 0x187   : > { %1215 = vst [vmem:[%s1969_s9 + $0x8] sm:$0xff] %v1203_v6   ;;  %v965_v14 = vadd.f32 %v1964_v33, %v949_v7  ;;  %v950_v15 = vadd.f32 %v926_v10, %v785_v9 }
 0x189   : > { %v966_v16 = vadd.f32 %v1964_v33, %v950_v15  ;;  %v974_v3 = vmax.f32 %v965_v14, 0.0 }
 0x18a   : > { %v766_v17 = vpop.f32.mrb[32].mxu0  ;;  %v931_v21 = vpop.f32.mrb[32].mxu1 }
 0x18b   : > { %v975_v19 = vmax.f32 %v966_v16, 0.0  ;;  %v786_v20 = vadd.f32 %v766_v17, %v1955_v13  ;;  %v1372_v22 = vpop.f32.mrb[33].mxu0  ;;  %v1408_v24 = vpop.f32.mrb[33].mxu1 }
 0x18c   : > { %v769_v25 = vpop.f32.mrb[34].mxu0  ;;  %v934_v28 = vpop.f32.mrb[34].mxu1 }
 0x18d   : > { %v1208_v8 = vpack.c.bf16 %v975_v19, %v974_v3  ;;  %v951_v26 = vadd.f32 %v931_v21, %v786_v20  ;;  %v787_v27 = vadd.f32 %v769_v25, %v1957_v18  ;;  %v1373_v29 = vpop.f32.mrb[35].mxu0  ;;  %v1409_v30 = vpop.f32.mrb[35].mxu1 }
 0x18f   : > { %1216 = vst [vmem:[%s1969_s9 + $0x10] sm:$0xff] %v1208_v8   ;;  %v967_v31 = vadd.f32 %v1964_v33, %v951_v26  ;;  %v952_v32 = vadd.f32 %v934_v28, %v787_v27 }
 0x191   : > { %v968_v34 = vadd.f32 %v1964_v33, %v952_v32  ;;  %v976_v35 = vmax.f32 %v967_v31, 0.0 }
 0x192   : > { %v774_v13 = vpop.f32.mrb[36].mxu0  ;;  %v939_v38 = vpop.f32.mrb[36].mxu1 }
 0x193   : > { %v977_v36 = vmax.f32 %v968_v34, 0.0  ;;  %v788_v37 = vadd.f32 %v774_v13, %v1959_v23  ;;  %v1376_v39 = vpop.f32.mrb[37].mxu0  ;;  %v1412_v18 = vpop.f32.mrb[37].mxu1 }
 0x194   : > { %v777_v40 = vpop.f32.mrb[38].mxu0  ;;  %v942_v43 = vpop.f32.mrb[38].mxu1 }
 0x195   : > { %v1213_v41 = vpack.c.bf16 %v977_v36, %v976_v35  ;;  %v953_v42 = vadd.f32 %v939_v38, %v788_v37  ;;  %v1377_v44 = vpop.f32.mrb[39].mxu0  ;;  %v1413_v45 = vpop.f32.mrb[39].mxu1 }
 0x197   : > { %1217 = vst [vmem:[%s1969_s9 + $0x18] sm:$0xff] %v1213_v41   ;;  %v969_v46 = vadd.f32 %v1964_v33, %v953_v42 }
 0x199   : > { %v978_v23 = vmax.f32 %v969_v46, 0.0 }
 0x19b   : > { %v1194_v47 = vpack.c.bf16 %v978_v23, %v978_v23 }
 0x19d   : > { %1024 = vst [vmem:[%s1969_s9 + $0x20] sm:$0xf] %v1194_v47 }
 0x19e   : > { %1597 = shalt.err (!%p1594_p7)
}
 0x19f   : > { %s1598_s30 = scalar_lea.hbm %s1994_s27, 576  ;;  %s1602_s11 = scalar_lea.hbm %s2042_s3, 1152 }
 0x1a0   : > { %p1599_p9 = scmp.ne.s32.totalorder %s1994_s27, %s1598_s30  ;;  %p1603_p5 = scmp.lt.u32.totalorder %s1994_s27, %s2042_s3 }
 0x1a1   : > { %p1604_p13 = scmp.lt.u32.totalorder %s1602_s11, %s1598_s30  ;;  %p1606_p4 = scmp.lt.u32.totalorder %s1598_s30, %s1994_s27 }
 0x1a2   : > { %p1600_p1 = pnand %p1599_p9, %p1779_p12 }
 0x1a3   : > { %p1605_p2 = por %p1604_p13, %p1603_p5 }
 0x1a4   : > { %p1601_p0 = pneg %p1600_p1 }
 0x1a5   : > { %p1607_p6 = por %p1606_p4, %p1605_p2 }
 0x1a7   : > { %p1608_p8 = pnand %p1607_p6, %p1601_p0 }
 0x1a9   : > { %1611 = shalt.err (!%p1608_p8)
}
 0x1aa   : > { %s1663_s8 = smov 64   ;;  %s1664_s9 = smov 4  }
 0x1ab   : > { %1425 = dma.vmem_to_hbm [thread:$0]  (%p1779_p12), %s1989_s29, 576, %s1994_s27, %s1026_s22, %s1663_s8, %s1663_s8, %s1664_s9  }
 0x1ac PF: > { %s1054_s25 = sand.u32 1, %s1642_s12   ;;  %p2057_p10 = scmp.ne.s32.totalorder %s2047_s19, 0 }
 0x1ad   : > { %p2058_p11 = scmp.ge.s32.totalorder %s1654_s15, 2  ;;  %s1055_s4 = scalar_lea.sflag [#allocation4], %s1054_s25 }
 0x1af   : > { %p1436_p3 = pnand %p2058_p11, %p2057_p10 }
 0x1b1   : > { %1637 = dma.done.wait (!%p1436_p3), %s1055_s4, 576  }
 0x1b2   : > { %1639 = vsyncadd (!%p1436_p3), %s1055_s4, 4294966720  ;;  %p17_p7 = scmp.ge.s32.totalorder %s1741_s24, 4   ;;  %s2059_s12 = smov %s1646_s13 }
 0x1b3   : > { %s2060_s13 = smov %s1650_s14  ;;  %s2061_s14 = smov %s1775_s17 }
 0x1b4   : > { %s2062_s15 = smov %s1741_s24  ;;  %19 = sbr.rel (!%p17_p7) target bundleno = 6 (0x6), region = 84 }
 0x1bb   :  { %1060 = vsyncpa [#allocation3], 1 }
 0x1bc   :  { %1062 = vsyncpa [#allocation3 + $0x1], 1 }
 0x1bd   :  { %1063 = vsyncpa [#allocation6], 1 }
 0x1be   :  { %1064 = vsyncpa [#allocation4], 1 }
 0x1bf   :  { %1066 = vsyncpa [#allocation4 + $0x1], 1 }

</bundles_post_ra>
